<compile_context>
chip_gen: v6e
topology: v6e:2x2x1
jax: 0.10.0
libtpu: 0.0.40
codegen_flags: <defaults>
</compile_context>

<pallas_src>
import math

import jax
import jax.numpy as jnp
from jax.experimental import pallas as pl
from jax.experimental.pallas import tpu as pltpu


def _identity_copy_kernel(x_ref, o_ref):
    # Pure copy: read the VMEM tile and write it back out unchanged.
    o_ref[...] = x_ref[...]


_LANE = 128
_TARGET_BLOCK_BYTES = 4 * 1024 * 1024      # per-block VMEM footprint target
_SMALL_SINGLE_BLOCK_BYTES = 2 * 1024 * 1024  # ragged arrays below this: one block


def to_device_pallas(img, donate=False):
    """Pallas equivalent of ToDevice.forward: returns a copy of `img`
    (same shape, dtype, values) produced on the TPU via a Pallas kernel.

    If `donate=True`, the output aliases the input buffer
    (input_output_aliases={0: 0}) — zero extra HBM allocation when the caller
    can donate the input.
    """
    orig_shape = img.shape
    dtype = img.dtype
    total = math.prod(orig_shape) if orig_shape else 1

    if total == 0:
        return img  # nothing to copy

    itemsize = jnp.dtype(dtype).itemsize
    sublane = max(8, 32 // itemsize)  # 8 for f32, 16 for bf16, 32 for int8/fp8
    total_bytes = total * itemsize
    aliases = {0: 0} if donate else {}
    cost = pl.CostEstimate(flops=0, transcendentals=0,
                           bytes_accessed=2 * total_bytes)

    # ---- Ragged but small: one full-extent 1D block, no pad/slice at all. ----
    if total % _LANE != 0 and total_bytes <= _SMALL_SINGLE_BLOCK_BYTES:
        flat = jnp.reshape(img, (-1,))
        out_flat = pl.pallas_call(
            _identity_copy_kernel,
            out_shape=jax.ShapeDtypeStruct((total,), dtype),
            compiler_params=pltpu.CompilerParams(
                vmem_limit_bytes=32 * 1024 * 1024,
            ),
            cost_estimate=cost,
            input_output_aliases=aliases,
        )(flat)
        return out_flat.reshape(orig_shape)

    # ---- 2D lane-dense slab path. ----
    pad_amount = 0
    if total % _LANE == 0:
        flat = jnp.reshape(img, (-1,))
        work_total = total
    else:
        # Large ragged fallback (rare): pad flat length up to a 128 multiple.
        padded_total = pl.cdiv(total, _LANE) * _LANE
        pad_amount = padded_total - total
        flat = jnp.pad(jnp.ravel(img), (0, pad_amount))
        work_total = padded_total

    # Choose a wide, lane-dense column count: the largest multiple of 128
    # (up to 64*128 = 8192) that divides the flat length. Wide lanes =>
    # unmasked vst and dense DMA.
    n_lane_groups = work_total // _LANE
    col_factor = 1
    for f in range(min(64, n_lane_groups), 0, -1):
        if n_lane_groups % f == 0:
            col_factor = f
            break
    cols = _LANE * col_factor
    rows = work_total // cols

    # Target ~4 MiB blocks. in + out, double-buffered => <= 16 MiB VMEM,
    # safe on v5e/v6e/v7x with the 32 MiB limit below.
    tile_rows = (_TARGET_BLOCK_BYTES // (cols * itemsize)) // sublane * sublane
    tile_rows = max(sublane, tile_rows)
    tile_rows = min(tile_rows, rows)
    if tile_rows != rows and tile_rows % sublane != 0:
        # Safety: block rows must be sublane-aligned or span the full dim.
        tile_rows = rows

    grid = (pl.cdiv(rows, tile_rows),)  # partial last block handled by Pallas

    x2d = flat.reshape(rows, cols)

    out2d = pl.pallas_call(
        _identity_copy_kernel,
        out_shape=jax.ShapeDtypeStruct((rows, cols), dtype),
        grid_spec=pltpu.PrefetchScalarGridSpec(
            num_scalar_prefetch=0,
            grid=grid,
            in_specs=[pl.BlockSpec((tile_rows, cols), lambda i: (i, 0))],
            out_specs=pl.BlockSpec((tile_rows, cols), lambda i: (i, 0)),
        ),
        compiler_params=pltpu.CompilerParams(
            dimension_semantics=("parallel",),  # v7x: shard grid across 2 TCs
            vmem_limit_bytes=32 * 1024 * 1024,
        ),
        cost_estimate=cost,
        input_output_aliases=aliases,
    )(x2d)

    if pad_amount:
        out = out2d.reshape(-1)[:total].reshape(orig_shape)
    else:
        out = out2d.reshape(orig_shape)
    return out


if __name__ == "__main__":
    key = jax.random.PRNGKey(0)
    # Small NCHW image batch: batch=2, channels=4, spatial=16x16.
    x = jax.random.normal(key, (2, 4, 16, 16), dtype=jnp.float32)

    y = to_device_pallas(x)
    y = jax.block_until_ready(y)

    assert y.shape == x.shape
    assert y.dtype == x.dtype
    assert bool(jnp.all(y == x))

    # Also exercise the ragged (non-multiple-of-128) single-block path.
    z = jax.random.normal(jax.random.PRNGKey(1), (3, 5, 7), dtype=jnp.float32)
    w = jax.block_until_ready(to_device_pallas(z))
    assert w.shape == z.shape and w.dtype == z.dtype
    assert bool(jnp.all(w == z))

    print("KERNEL_OK")
</pallas_src>

<mosaic_0001>
module attributes {stable_mosaic.version = 11 : i64} {
  func.func @_identity_copy_kernel(%arg0: i32, %arg1: memref<1x2048xf32, #tpu.memory_space<vmem>>, %arg2: memref<1x2048xf32, #tpu.memory_space<vmem>>) attributes {dimension_semantics = [#tpu.dimension_semantics<parallel>], iteration_bounds = array<i64: 1>, scalar_prefetch = 0 : i64, scratch_operands = 0 : i64, tpu.core_type = #tpu.core_type<tc>, window_params = [{transform_indices = @transform_0, window_bounds = array<i64: 1, 2048>}, {transform_indices = @transform_1, window_bounds = array<i64: 1, 2048>}]} {
    %c0 = arith.constant 0 : index
    %c0_0 = arith.constant 0 : index
    %0 = vector.load %arg1[%c0, %c0_0] : memref<1x2048xf32, #tpu.memory_space<vmem>>, vector<1x2048xf32>
    %c0_1 = arith.constant 0 : index
    %c0_2 = arith.constant 0 : index
    %1 = vector.load %arg2[%c0_1, %c0_2] : memref<1x2048xf32, #tpu.memory_space<vmem>>, vector<1x2048xf32>
    tpu.vector_store %arg2[%c0_1, %c0_2], %0 {strides = array<i32>} : memref<1x2048xf32, #tpu.memory_space<vmem>>, vector<1x2048xf32>,
    return
  }
  func.func @transform_0(%arg0: i32) -> (i32, i32) {
    %c0_i32 = arith.constant 0 : i32
    %c0_i32_0 = arith.constant 0 : i32
    return %arg0, %c0_i32 : i32, i32
  }
  func.func @transform_1(%arg0: i32) -> (i32, i32) {
    %c0_i32 = arith.constant 0 : i32
    %c0_i32_0 = arith.constant 0 : i32
    return %arg0, %c0_i32 : i32, i32
  }
}

</mosaic_0001>

<bundles_post_ra>
// kernel: tpu_custom_call.1
= control target key start
LH: loop header
LB: loop body
LE: loop exit
PB: predicated region body
PF: predicated region fallthrough
CT: control target
= control target key end

     0   :  { %6 = vsyncpa [#allocation3], 0  ;;  %s104_s0 = inlined_call_operand.hbm [shape: f32[1,2048], index: 0, kind: input, shape index: {}]   ;;  %s105_s1 = inlined_call_operand.hbm [shape: f32[1,2048], index: 1, kind: output, shape index: {}]  }
   0x1   :  { %7 = vsyncpa [#allocation4], 0  ;;  %s86_s6 = smov [#allocation2]  }
   0x2   :  { %s14_s7 = sshll.u32 %s86_s6, 4  ;;  %s15_s7 = int_to_ptr.vmem [resolvable:$true] %s14_s7 }
   0x3   :  { %s50_s8 = scalar_lea.vmem %s15_s7, 256  ;;  %p55_p1 = scmp.lt.s32.totalorder %s15_s7, %s15_s7 }
   0x4   :  { %p51_p0 = scmp.ne.s32.totalorder %s15_s7, %s50_s8  ;;  %p56_p2 = scmp.lt.s32.totalorder %s50_s8, %s50_s8 }
   0x6   :  { %p57_p3 = por %p56_p2, %p55_p1 }
   0x8   :  { %p58_p4 = pnand %p57_p3, %p51_p0 }
   0xa   :  { %61 = shalt.err (!%p58_p4)
}
   0xb   :  { %17 = dma.hbm_to_vmem [thread:$0]  %s104_s0, 256, %s15_s7, [#allocation3]  }
   0xc   :  { %82 = dma.done.wait [#allocation3], 256  }
   0xd   :  { %83 = vsyncadd [#allocation3], 4294967040  ;;  %s87_s11 = smov [#allocation5]   ;;  %v21_v0 = vld [vmem:[#allocation2] sm:$0xff]  ;;  %v22_v1 = vld [vmem:[#allocation2 + $0x8] sm:$0xff] }
   0xe   :  { %s31_s12 = sshll.u32 %s87_s11, 4  ;;  %23 = vst [vmem:[#allocation5] sm:$0xff] %v21_v0  ;;  %24 = vst [vmem:[#allocation5 + $0x8] sm:$0xff] %v22_v1  ;;  %s32_s12 = int_to_ptr.vmem [resolvable:$true] %s31_s12 }
   0xf   :  { %s62_s13 = scalar_lea.vmem %s32_s12, 256  ;;  %p67_p6 = scmp.lt.s32.totalorder %s32_s12, %s32_s12 }
  0x10   :  { %p63_p5 = scmp.ne.s32.totalorder %s32_s12, %s62_s13  ;;  %p68_p7 = scmp.lt.s32.totalorder %s62_s13, %s62_s13 }
  0x12   :  { %p69_p8 = por %p68_p7, %p67_p6 }
  0x14   :  { %p70_p9 = pnand %p69_p8, %p63_p5 }
  0x16   :  { %73 = shalt.err (!%p70_p9)
}
  0x17   :  { %34 = dma.vmem_to_hbm [thread:$0]  %s32_s12, 256, %s105_s1, [#allocation4]  }
  0x18   :  { %84 = dma.done.wait [#allocation4], 256  }
  0x19   :  { %85 = vsyncadd [#allocation4], 4294967040 }
  0x1a   :  { %38 = vsyncpa [#allocation3], 1 }
  0x1b   :  { %39 = vsyncpa [#allocation4], 1 }

</bundles_post_ra>
